<compile_context>
chip_gen: v5e
topology: v5e:2x2
jax: 0.10.0
libtpu: 0.0.40
codegen_flags: <defaults>
</compile_context>

<pallas_src>
import jax
import jax.numpy as jnp
from jax.experimental import pallas as pl
from jax.experimental.pallas import tpu as pltpu


def _round_up(x, m):
    return ((x + m - 1) // m) * m


# ----------------------------------------------------------------------------
# Pallas kernel: fused multi-layer softplus(conf) reduction
#   out = sum over layers L of  (1/numel_L) * sum(softplus(conf_L))
# ----------------------------------------------------------------------------
def _make_conf_softplus_kernel(tr, tiles_per_chunk, tile_starts, tile_counts,
                               inv_counts):
    sub_tiles = tr // 8

    def kernel(x_ref, out_ref, acc_ref):
        k = pl.program_id(1)

        @pl.when(k == 0)
        def _init():
            acc_ref[...] = jnp.zeros_like(acc_ref)

        x = x_ref[...].astype(jnp.float32)
        # Numerically stable softplus.  Pad entries carry x = -60 and therefore
        # contribute ~1e-26 each (negligible).
        sp = jnp.maximum(x, 0.0) + jnp.log1p(jnp.exp(-jnp.abs(x)))

        # Fold (tr, 128) -> (8, 128) with a log-depth pairwise tree of pure VPU
        # adds over static, vreg-aligned slices (no XLU, short dependence chain).
        chunks = [sp[8 * j:8 * (j + 1), :] for j in range(sub_tiles)]
        while len(chunks) > 1:
            nxt = [chunks[i] + chunks[i + 1]
                   for i in range(0, len(chunks) - 1, 2)]
            if len(chunks) % 2:
                nxt.append(chunks[-1])
            chunks = nxt
        part = chunks[0]

        # Per-tile weight = 1 / numel(layer owning this tile) (0 for the
        # chunk-padding tiles).  Static compare/select chain over 2-3 layers;
        # pure scalar work, never the binding slot here.
        flat_t = pl.program_id(0) * tiles_per_chunk + k
        w = jnp.float32(0.0)
        for start, cnt, inv in zip(tile_starts, tile_counts, inv_counts):
            in_layer = jnp.logical_and(flat_t >= start, flat_t < start + cnt)
            w = jnp.where(in_layer, jnp.float32(inv), w)

        acc_ref[...] += w * part

        @pl.when(k == pl.num_programs(1) - 1)
        def _finish():
            out_ref[...] = acc_ref[...]

    return kernel


def _fused_conf_softplus(conf_list, *, stream_dtype=jnp.bfloat16,
                         max_tile_rows=1024, max_chunks=2,
                         core_parallel=False):
    """Returns sum over YOLO layers of mean(softplus(conf_L)) as an f32 scalar."""
    lane = 128
    sizes = [int(x.size) for x in conf_list]
    rows = [pl.cdiv(s, lane) for s in sizes]
    total_rows = sum(rows)

    # Big tiles cut the ~0.35us per-grid-step overhead; shrink until the total
    # padded rows are within 25% of the real rows so small layers don't DMA
    # mostly-pad tiles.
    tr = min(max_tile_rows, _round_up(max(rows), 8))
    while tr > 8 and sum(pl.cdiv(r, tr) * tr for r in rows) > 1.25 * total_rows:
        tr = max(8, _round_up(tr // 2, 8))

    tiles_per_layer = [pl.cdiv(r, tr) for r in rows]
    num_tiles = sum(tiles_per_layer)
    num_chunks = min(max_chunks, num_tiles)
    num_tiles_p = _round_up(num_tiles, num_chunks)
    tpc = num_tiles_p // num_chunks

    pad_val = -60.0          # finite in every float dtype; softplus(-60) ~ 0
    xs = []
    for x, s, tl in zip(conf_list, sizes, tiles_per_layer):
        pad = tl * tr * lane - s
        xs.append(jnp.pad(x.reshape(-1).astype(stream_dtype), (0, pad),
                          constant_values=pad_val))
    extra = (num_tiles_p - num_tiles) * tr * lane
    if extra:
        xs.append(jnp.full((extra,), pad_val, dtype=stream_dtype))
    x2d = jnp.concatenate(xs).reshape(-1, lane)

    starts, acc = [], 0
    for tl in tiles_per_layer:
        starts.append(acc)
        acc += tl
    inv_counts = [1.0 / float(s) for s in sizes]

    kernel = _make_conf_softplus_kernel(tr, tpc, tuple(starts),
                                        tuple(tiles_per_layer),
                                        tuple(inv_counts))
    tile_spec = pl.BlockSpec((tr, lane), lambda c, k: (c * tpc + k, 0))

    n_elems = num_tiles_p * tr * lane
    cost = pl.CostEstimate(
        flops=6 * n_elems,
        transcendentals=2 * n_elems,
        bytes_accessed=n_elems * jnp.dtype(stream_dtype).itemsize
        + num_chunks * 8 * lane * 4)

    if core_parallel:
        # Real two-TensorCore split of the chunk axis on v7x; off by default
        # so single-TC v5e/v6e compile paths are never exercised differently.
        dims = (pltpu.CORE_PARALLEL, pltpu.ARBITRARY)
    else:
        dims = ("parallel", "arbitrary")

    partials = pl.pallas_call(
        kernel,
        out_shape=jax.ShapeDtypeStruct((num_chunks * 8, lane), jnp.float32),
        grid=(num_chunks, tpc),
        in_specs=[tile_spec],
        out_specs=pl.BlockSpec((8, lane), lambda c, k: (c, 0)),
        scratch_shapes=[pltpu.VMEM((8, lane), jnp.float32)],
        compiler_params=pltpu.CompilerParams(
            dimension_semantics=dims,
            # Let XLA fuse the cast/pad/concat/reshape producers into the
            # operand instead of materializing the slab in HBM first.
            allow_input_fusion=[True]),
        cost_estimate=cost,
    )(x2d)
    # Tiny lane-dense partial-sum slab; final reduce handled by XLA.
    return jnp.sum(partials)


# ----------------------------------------------------------------------------
# Plain-JAX glue: build_targets + tiny gathered losses (mirrors the module)
# ----------------------------------------------------------------------------
def _wh_iou(anchor, gwh):
    w1, h1 = anchor[0], anchor[1]
    w2, h2 = gwh[:, 0], gwh[:, 1]
    inter = jnp.minimum(w1, w2) * jnp.minimum(h1, h2)
    union = w1 * h1 + w2 * h2 - inter + 1e-16
    return inter / union


def _build_targets_layer(targets, anchor_vec, nG, iou_thresh):
    # targets columns: [b, cls, x, y, w, h]  (same as the PyTorch module)
    gwh = targets[:, 4:6] * nG
    ious = jnp.stack([_wh_iou(anchor_vec[ai], gwh)
                      for ai in range(anchor_vec.shape[0])], axis=0)
    a = jnp.argmax(ious, axis=0).astype(jnp.int32)
    iou_max = jnp.max(ious, axis=0)
    # PyTorch physically drops rows with iou <= thresh (dynamic shape); we keep
    # all rows and carry a validity mask instead - numerically equivalent.
    valid = iou_max > iou_thresh
    b = targets[:, 0].astype(jnp.int32)
    c = targets[:, 1].astype(jnp.int32)
    gxy = targets[:, 2:4] * nG
    gi = jnp.clip(gxy[:, 0].astype(jnp.int32), 0, nG - 1)
    gj = jnp.clip(gxy[:, 1].astype(jnp.int32), 0, nG - 1)
    txy = gxy - jnp.floor(gxy)
    twh = jnp.log(gwh / anchor_vec[a])
    twh = jnp.where(valid[:, None], twh, 0.0)   # kill NaN/inf on masked rows
    return b, a, gj, gi, txy, twh, c, valid


def yolov3_loss(p, targets, anchor_vecs, nGs, conf, train_out=True):
    iou_thresh = conf['loss_iou_thresh']
    k = conf['loss_mult']
    xy_frac = conf['xy_loss_frac']
    wh_frac = conf['wh_loss_frac']
    cls_frac = conf['cls_loss_frac']
    conf_frac = conf['conf_loss_frac']

    nt = int(targets.shape[0])          # static

    lxy = jnp.zeros((1,), jnp.float32)
    lwh = jnp.zeros((1,), jnp.float32)
    lcls = jnp.zeros((1,), jnp.float32)

    conf_logits = []
    conf_correction = jnp.float32(0.0)

    for pi0, anchor_vec, nG in zip(p, anchor_vecs, nGs):
        B, A, nGp, _, C = pi0.shape
        numel = B * A * nGp * nGp
        # TODO(synk): pi0[..., 4] is a stride-C channel extraction that reads
        # the full prediction tensor; emitting the conf channel contiguously
        # from the model head would remove that upstream HBM traffic.
        conf_logits.append(pi0[..., 4])

        if nt == 0:
            continue    # PyTorch's `if nt:` guard; tconf stays all-zero

        b, a, gj, gi, txy, twh, tcls, valid = _build_targets_layer(
            targets, anchor_vec, nG, iou_thresh)
        valid_f = valid.astype(jnp.float32)
        nv = jnp.sum(valid_f)

        pi = pi0[b, a, gj, gi].astype(jnp.float32)

        # ---- confidence correction:  BCE(x, tconf) = softplus(x) - x*tconf.
        # softplus part is the fused kernel; subtract x at UNIQUE matched cells
        # (duplicates collapse exactly like the reference's tconf scatter).
        cell = ((b * A + a) * nGp + gj) * nGp + gi
        same = cell[:, None] == cell[None, :]
        earlier = jnp.tril(jnp.ones((nt, nt), dtype=bool), -1)
        dup = jnp.any(same & earlier & valid[None, :], axis=1)
        first = jnp.logical_and(valid, jnp.logical_not(dup))
        conf_correction = conf_correction + (
            jnp.sum(jnp.where(first, pi[:, 4], 0.0)) / float(numel))

        # ---- tiny masked xy / wh / cls losses on gathered (nt, C) data ----
        denom2 = jnp.maximum(2.0 * nv, 1.0)
        dxy = jax.nn.sigmoid(pi[:, 0:2]) - txy
        xy_mse = jnp.sum(valid_f[:, None] * dxy * dxy) / denom2
        dwh = pi[:, 2:4] - twh
        wh_mse = jnp.sum(valid_f[:, None] * dwh * dwh) / denom2

        nC = C - 5
        if nC > 0:
            tcls_c = jnp.clip(tcls, 0, nC - 1)
            logp = jax.nn.log_softmax(pi[:, 5:], axis=-1)
            ce = -jnp.take_along_axis(logp, tcls_c[:, None], axis=-1)[:, 0]
            cls_ce = jnp.sum(valid_f * ce) / jnp.maximum(nv, 1.0)
        else:
            cls_ce = jnp.float32(0.0)

        has = (nv > 0).astype(jnp.float32)     # matches `if nt:` post-filter
        lxy = lxy + has * (k * xy_frac) * xy_mse
        lwh = lwh + has * (k * wh_frac) * wh_mse
        lcls = lcls + has * (k * cls_frac) * cls_ce

    # ---- fused confidence term over all YOLO layers: single Pallas kernel ----
    fused = _fused_conf_softplus(conf_logits)
    lconf = ((k * conf_frac) * (fused - conf_correction)).reshape(1)

    loss = lxy + lwh + lconf + lcls
    if train_out:
        return loss, lxy, lwh, lconf, lcls
    return loss


# ----------------------------------------------------------------------------
# Demo
# ----------------------------------------------------------------------------
if __name__ == "__main__":
    key = jax.random.PRNGKey(0)
    B, A, C = 2, 3, 6          # 5 box/conf channels + 1 class
    nGs = [16, 8]
    anchor_vecs = [
        jnp.array([[1.5, 2.0], [3.0, 3.5], [4.5, 5.5]], jnp.float32),
        jnp.array([[1.0, 1.25], [2.0, 2.5], [3.25, 4.0]], jnp.float32),
    ]

    k1, k2, k3 = jax.random.split(key, 3)
    p = [
        jax.random.normal(k1, (B, A, nGs[0], nGs[0], C), jnp.float32),
        jax.random.normal(k2, (B, A, nGs[1], nGs[1], C), jnp.float32),
    ]

    nt = 8
    kb, kx, kw = jax.random.split(k3, 3)
    tb = jax.random.randint(kb, (nt,), 0, B).astype(jnp.float32)
    tcls = jnp.zeros((nt,), jnp.float32)
    t_xy = jax.random.uniform(kx, (nt, 2), minval=0.05, maxval=0.95)
    t_wh = jax.random.uniform(kw, (nt, 2), minval=0.05, maxval=0.50)
    targets = jnp.concatenate([tb[:, None], tcls[:, None], t_xy, t_wh], axis=1)

    conf = {
        'loss_iou_thresh': 0.10,
        'loss_mult': 4.0,
        'xy_loss_frac': 0.2,
        'wh_loss_frac': 0.1,
        'cls_loss_frac': 0.05,
        'conf_loss_frac': 0.65,
    }

    loss_fn = jax.jit(lambda preds, tgts: yolov3_loss(
        preds, tgts, anchor_vecs, nGs, conf, train_out=True))
    losses = jax.block_until_ready(loss_fn(p, targets))
    total, lxy, lwh, lconf, lcls = losses
    assert all(jnp.isfinite(x).all() for x in (total, lxy, lwh, lconf, lcls))
    print("KERNEL_OK")
</pallas_src>

<mosaic_0001>
module attributes {stable_mosaic.version = 11 : i64} {
  func.func @kernel(%arg0: i32, %arg1: i32, %arg2: memref<8x128xbf16, #tpu.memory_space<vmem>>, %arg3: memref<8x128xf32, #tpu.memory_space<vmem>>, %arg4: memref<8x128xf32, #tpu.memory_space<vmem>>) attributes {dimension_semantics = [#tpu.dimension_semantics<parallel>, #tpu.dimension_semantics<arbitrary>], iteration_bounds = array<i64: 2, 2>, scalar_prefetch = 0 : i64, scratch_operands = 1 : i64, tpu.core_type = #tpu.core_type<tc>, window_params = [{transform_indices = @transform_0, window_bounds = array<i64: 8, 128>}, {transform_indices = @transform_1, window_bounds = array<i64: 8, 128>}]} {
    %c0_i32 = arith.constant 0 : i32
    %0 = arith.cmpi eq, %arg1, %c0_i32 : i32
    %1 = arith.extui %0 : i1 to i32
    %c0_i32_0 = arith.constant 0 : i32
    %2 = arith.cmpi ne, %1, %c0_i32_0 : i32
    scf.if %2 {
      %cst_14 = arith.constant 0.000000e+00 : f32
      %31 = vector.broadcast %cst_14 : f32 to vector<8x128xf32>
      %c0_15 = arith.constant 0 : index
      %c0_16 = arith.constant 0 : index
      %32 = vector.load %arg4[%c0_15, %c0_16] : memref<8x128xf32, #tpu.memory_space<vmem>>, vector<8x128xf32>
      tpu.vector_store %arg4[%c0_15, %c0_16], %31 {strides = array<i32>} : memref<8x128xf32, #tpu.memory_space<vmem>>, vector<8x128xf32>,
    } else {
    }
    %c0 = arith.constant 0 : index
    %c0_1 = arith.constant 0 : index
    %3 = vector.load %arg2[%c0, %c0_1] : memref<8x128xbf16, #tpu.memory_space<vmem>>, vector<8x128xbf16>
    %4 = arith.extf %3 : vector<8x128xbf16> to vector<8x128xf32>
    %cst = arith.constant 0.000000e+00 : f32
    %5 = vector.broadcast %cst : f32 to vector<8x128xf32>
    %6 = arith.maximumf %4, %5 : vector<8x128xf32>
    %7 = math.absf %4 : vector<8x128xf32>
    %cst_2 = arith.constant 0.000000e+00 : f32
    %8 = vector.broadcast %cst_2 : f32 to vector<8x128xf32>
    %9 = arith.subf %8, %7 : vector<8x128xf32>
    %10 = math.exp %9 : vector<8x128xf32>
    %11 = math.log1p %10 : vector<8x128xf32>
    %12 = arith.addf %6, %11 : vector<8x128xf32>
    %c2_i32 = arith.constant 2 : i32
    %13 = arith.muli %arg0, %c2_i32 : i32
    %14 = arith.addi %13, %arg1 : i32
    %c0_i32_3 = arith.constant 0 : i32
    %15 = arith.cmpi sge, %14, %c0_i32_3 : i32
    %c2_i32_4 = arith.constant 2 : i32
    %16 = arith.cmpi slt, %14, %c2_i32_4 : i32
    %17 = arith.andi %15, %16 : i1
    %cst_5 = arith.constant 6.51041686E-4 : f32
    %cst_6 = arith.constant 0.000000e+00 : f32
    %18 = arith.select %17, %cst_5, %cst_6 : f32
    %c2_i32_7 = arith.constant 2 : i32
    %19 = arith.cmpi sge, %14, %c2_i32_7 : i32
    %c3_i32 = arith.constant 3 : i32
    %20 = arith.cmpi slt, %14, %c3_i32 : i32
    %21 = arith.andi %19, %20 : i1
    %cst_8 = arith.constant 0.00260416674 : f32
    %22 = arith.select %21, %cst_8, %18 : f32
    %c0_9 = arith.constant 0 : index
    %c0_10 = arith.constant 0 : index
    %23 = vector.load %arg4[%c0_9, %c0_10] : memref<8x128xf32, #tpu.memory_space<vmem>>, vector<8x128xf32>
    %24 = vector.broadcast %22 : f32 to vector<8x128xf32>
    %25 = arith.mulf %24, %12 : vector<8x128xf32>
    %26 = arith.addf %23, %25 : vector<8x128xf32>
    %c0_11 = arith.constant 0 : index
    %c0_12 = arith.constant 0 : index
    %27 = vector.load %arg4[%c0_11, %c0_12] : memref<8x128xf32, #tpu.memory_space<vmem>>, vector<8x128xf32>
    tpu.vector_store %arg4[%c0_11, %c0_12], %26 {strides = array<i32>} : memref<8x128xf32, #tpu.memory_space<vmem>>, vector<8x128xf32>,
    %c1_i32 = arith.constant 1 : i32
    %28 = arith.cmpi eq, %arg1, %c1_i32 : i32
    %29 = arith.extui %28 : i1 to i32
    %c0_i32_13 = arith.constant 0 : i32
    %30 = arith.cmpi ne, %29, %c0_i32_13 : i32
    scf.if %30 {
      %c0_14 = arith.constant 0 : index
      %c0_15 = arith.constant 0 : index
      %31 = vector.load %arg4[%c0_14, %c0_15] : memref<8x128xf32, #tpu.memory_space<vmem>>, vector<8x128xf32>
      %c0_16 = arith.constant 0 : index
      %c0_17 = arith.constant 0 : index
      %32 = vector.load %arg3[%c0_16, %c0_17] : memref<8x128xf32, #tpu.memory_space<vmem>>, vector<8x128xf32>
      tpu.vector_store %arg3[%c0_16, %c0_17], %31 {strides = array<i32>} : memref<8x128xf32, #tpu.memory_space<vmem>>, vector<8x128xf32>,
    } else {
    }
    return
  }
  func.func @transform_0(%arg0: i32, %arg1: i32) -> (i32, i32) {
    %c2_i32 = arith.constant 2 : i32
    %0 = arith.muli %arg0, %c2_i32 : i32
    %1 = arith.addi %0, %arg1 : i32
    %c0_i32 = arith.constant 0 : i32
    %c0_i32_0 = arith.constant 0 : i32
    return %1, %c0_i32 : i32, i32
  }
  func.func @transform_1(%arg0: i32, %arg1: i32) -> (i32, i32) {
    %c0_i32 = arith.constant 0 : i32
    %c0_i32_0 = arith.constant 0 : i32
    return %arg0, %c0_i32 : i32, i32
  }
}

</mosaic_0001>

<bundles_post_ra>
// kernel: _lambda_.2
= control target key start
LH: loop header
LB: loop body
LE: loop exit
PB: predicated region body
PF: predicated region fallthrough
CT: control target
= control target key end

     0   :  { %s855_s9 = smov 0   ;;  %s857_s10 = smov 0   ;;  %s987_s0 = inlined_call_operand.<no memory space> [shape: s32[], index: 0, kind: input, shape index: {}]   ;;  %s988_s1 = inlined_call_operand.vmem [shape: bf16[384], index: 1, kind: input, shape index: {}]   ;;  %s989_s2 = inlined_call_operand.<no memory space> [shape: bf16[], index: 2, kind: input, shape index: {}]   ;;  %s990_s3 = inlined_call_operand.<no memory space> [shape: s32[], index: 3, kind: input, shape index: {}]   ;;  %s991_s4 = inlined_call_operand.vmem [shape: bf16[1536], index: 4, kind: input, shape index: {}]   ;;  %s992_s5 = inlined_call_operand.vmem [shape: bf16[1024], index: 5, kind: input, shape index: {}]   ;;  %s993_s6 = inlined_call_operand.<no memory space> [shape: bf16[], index: 6, kind: input, shape index: {}]   ;;  %s994_s7 = inlined_call_operand.vmem [shape: f32[16,128], index: 7, kind: output, shape index: {}]  }
   0x1   :  { %997 = sst [smem:[#allocation23_spill]] %s994_s7  ;;  %v12_v0 = vstv %s987_s0  ;;  %v13_v1 = vstv %s989_s2  ;;  %v18_v2 = vstv %s990_s3  ;;  %v24_v3 = vstv %s993_s6  ;;  %s859_s11 = smov 0  }
   0x2   :  { %v851_v4 = vunpack.i.l.bf16 %v13_v1  ;;  %v853_v5 = vunpack.i.l.bf16 %v24_v3  ;;  %s861_s12 = smov 0   ;;  %s863_s2 = smov 0  }
   0x3 LB: > { %998 = sst [smem:[#allocation19_spill]] %s788_s11  ;;  %s48_s6 = sadd.s32 1, %s788_s11  ;;  %s796_s2 = sphi %s863_s2, %s39_s2   ;;  %s792_s12 = sphi %s861_s12, %s1010_s12   ;;  %s788_s11 = sphi %s859_s11, %s1009_s11   ;;  %s784_s10 = sphi %s857_s10, %s1008_s10   ;;  %s780_s9 = sphi %s855_s9, %s1007_s9  }
   0x4   : > { %999 = sst [smem:[#allocation20_spill]] %s792_s12  ;;  %s51_s13 = sadd.s32 1, %s792_s12 }
   0x5   : > { %p49_p0 = scmp.ge.s32.totalorder %s48_s6, 2  ;;  %p679_p1 = scmp.ge.s32.totalorder %s796_s2, 1 }
   0x6   : > { %p264_p2 = scmp.lt.s32.totalorder %s796_s2, 5 }
   0x7   : > { %s1012_s6 = smov (%p49_p0, %s48_s6), 0  ;;  %s1014_s13 = smov (!%p49_p0, %s51_s13), %s792_s12 }
   0x8   : > { %1000 = sst [smem:[#allocation21_spill]] %s1012_s6  ;;  %p265_p3 = pnand %p679_p1, %p264_p2 }
   0x9   : > { %p53_p4 = scmp.ge.s32.totalorder %s1014_s13, 2 }
   0xa   : > { %268 = sbr.rel (%p265_p3) target bundleno = 109 (0x6d), region = 32 }
   0xb   : > { %s1016_s13 = smov (%p53_p4, %s1014_s13), 0 }
   0xc   : > { %1001 = sst [smem:[#allocation22_spill]] %s1016_s13 }
   0xf   : > { %s680_s14 = sshll.u32 %s784_s10, 1  ;;  %p403_p7 = scmp.lt.s32.totalorder %s784_s10, 1  ;;  %v429_v6 = vlaneseq }
  0x10   : > { %s888_s15 = sadd.s32 %s780_s9, %s680_s14  ;;  %s1002_s7 = sld [smem:[#allocation23_spill]] }
  0x11   : > { %p370_p5 = scmp.lt.s32.totalorder %s888_s15, 1  ;;  %s681_s16 = sadd.s32 4294967294, %s888_s15 }
  0x12   : > { %p342_p6 = scmp.lt.s32.totalorder %s681_s16, 0  ;;  %s408_s18 = ssub.s32 2, %s888_s15 }
  0x13   : > { %s371_s17 = scalar_select %p370_p5, %s888_s15, 1 }
  0x14   : > { %s343_s19 = scalar_select %p342_p6, %s681_s16, 0 }
  0x15   : > { %s1018_s10 = smov (!%p403_p7, %s784_s10), 1  ;;  %s895_s20 = sadd.s32 4294967293, %s888_s15 }
  0x16   : > { %s897_s21 = sor.u32 %s681_s16, %s408_s18  ;;  %s691_s22 = sshll.u32 %s1018_s10, 3  ;;  %v475_v16 = vstv %s895_s20 }
  0x17   : > { %s902_s25 = scalar_lea.vmem %s1002_s7, %s691_s22  ;;  %p410_p8 = scmp.lt.s32.totalorder %s897_s21, 0  ;;  %v425_v9 = vstv %s897_s21  ;;  %vm476_vm7 = vcmp.lt.s32.totalorder %v475_v16, 0 }
  0x18   : > { %s685_s26 = sshll.u32 %s371_s17, 2  ;;  %p390_p9 = scmp.lt.s32.totalorder %s895_s20, 0  ;;  %vm426_vm0 = vcmp.lt.s32.totalorder %v425_v9, 0 }
  0x19   : > { %s411_s27 = scalar_select %p410_p8, 0, 255 }
  0x1a   : > { %s391_s28 = scalar_select %p390_p9, %s895_s20, 0 }
  0x1b   : > { %s412_s29 = sand.u32 15, %s411_s27  ;;  %s434_s30 = ssub.s32 1, %s888_s15 }
  0x1c   : > { %s682_s8 = sshll.u32 %s343_s19, 1  ;;  %s413_s14 = sshrl.u32 %s412_s29, 1  ;;  %v450_v12 = vstv %s434_s30 }
  0x1d   : > { %s913_s10 = scalar_lea.vmem %s991_s4, %s685_s26  ;;  %s414_s22 = sor.u32 %s413_s14, %s412_s29  ;;  %vm451_vm4 = vcmp.lt.s32.totalorder %v450_v12, 0 }
  0x1e   : > { %s415_s23 = sand.u32 5, %s414_s22  ;;  %p435_p10 = scmp.lt.s32.totalorder %s434_s30, 0 }
  0x1f   : > { %s345_s7 = scalar_lea.vmem %s988_s1, %s682_s8  ;;  %s416_s13 = sshrl.u32 %s415_s23, 1 }
  0x20   : > { %s417_s27 = sor.u32 %s416_s13, %s415_s23  ;;  %s694_s6 = sshll.u32 %s888_s15, 10 }
  0x21   : > { %s689_s19 = sshll.u32 %s391_s28, 2  ;;  %s418_s12 = sand.u32 3, %s417_s27  ;;  %v430_v8 = vstv %s694_s6 }
  0x22   : > { %s436_s11 = scalar_select %p435_p10, 0, 255  ;;  %v419_v7 = vld [vmem:[%s345_s7] sm:%s418_s12]  ;;  %v431_v11 = vadd.s32 %v430_v8, %v429_v6 }
  0x23   : > { %s461_s26 = scalar_select %p390_p9, 0, 255  ;;  %v420_v10 = vunpack.c.l.bf16 %v419_v7 }
  0x24   : > { %s926_s14 = scalar_lea.vmem %s992_s5, %s689_s19  ;;  %s437_s18 = sshrl.u32 %s436_s11, 1  ;;  %vm432_vm1 = vcmp.lt.s32.totalorder %v431_v11, 2432  ;;  %vm936_vm2 = vcmp.ge.s32.totalorder %v431_v11, %v18_v2  ;;  %vm944_vm3 = vcmp.lt.s32.totalorder %v431_v11, %v12_v0  ;;  %vm457_vm6 = vcmp.lt.s32.totalorder %v431_v11, 1536 }
  0x25   : > { %s438_s8 = sor.u32 %s437_s18, %s436_s11  ;;  %s462_s22 = sshrl.u32 %s461_s26, 1  ;;  %v427_v13 = vsel %vm426_vm0, %v851_v4, %v420_v10  ;;  %vm704_vm5 = vmand %vm936_vm2, %vm944_vm3  ;;  %vm487_vm8 = vcmp.lt.s32.totalorder %v431_v11, %v18_v2 }
  0x26   : > { %s439_s13 = sand.u32 85, %s438_s8  ;;  %s463_s28 = sor.u32 %s462_s22, %s461_s26  ;;  %v433_v17 = vsel %vm432_vm1, %v427_v13, %v851_v4 }
  0x27   : > { %s440_s23 = sshrl.u32 %s439_s13, 1  ;;  %s464_s7 = sand.u32 85, %s463_s28  ;;  %v522_v23 = vsel %vm704_vm5, %v433_v17, %v853_v5 }
  0x28   : > { %s441_s12 = sor.u32 %s440_s23, %s439_s13  ;;  %s465_s6 = sshrl.u32 %s464_s7, 1 }
  0x29   : > { %s442_s17 = sand.u32 51, %s441_s12  ;;  %s466_s24 = sor.u32 %s465_s6, %s464_s7 }
  0x2a   : > { %s443_s11 = sshrl.u32 %s442_s17, 2  ;;  %s467_s21 = sand.u32 51, %s466_s24 }
  0x2b   : > { %s444_s30 = sor.u32 %s443_s11, %s442_s17  ;;  %s468_s29 = sshrl.u32 %s467_s21, 2 }
  0x2c   : > { %s445_s18 = sand.u32 15, %s444_s30  ;;  %s469_s8 = sor.u32 %s468_s29, %s467_s21 }
  0x2d   : > { %v446_v18 = vld [vmem:[%s913_s10] sm:%s445_s18]  ;;  %s470_s22 = sand.u32 15, %s469_s8  ;;  %p706_p11 = scmp.ne.s32.totalorder %s780_s9, 0 }
  0x2e   : > { %v447_v19 = vunpack.c.l.bf16 %v446_v18  ;;  %v471_v20 = vld [vmem:[%s926_s14] sm:%s470_s22] }
  0x2f   : > { %v472_v21 = vunpack.c.l.bf16 %v471_v20 }
  0x30   : > { %v452_v22 = vsel %vm451_vm4, %v851_v4, %v447_v19 }
  0x31   : > { %v458_v24 = vsel %vm457_vm6, %v452_v22, %v851_v4  ;;  %v477_v25 = vsel %vm476_vm7, %v853_v5, %v472_v21 }
  0x32   : > { %v492_v26 = vsel %vm487_vm8, %v458_v24, %v853_v5 }
  0x33   : > { %v526_v27 = vmax.f32 %v492_v26, %v522_v23 }
  0x35   : > { %v530_v28 = vmax.f32 %v526_v27, %v477_v25  ;;  %539 = sbr.rel (%p706_p11) target bundleno = 60 (0x3c), region = 36 }
  0x37   : > { %v532_v29 = vpack.c.bf16 0.0, %v530_v28 }
  0x39   : > { %535 = vst [vmem:[#allocation18] sm:$0xf] %v532_v29 }
  0x3a   : > { %v798_v30 = vmov 0.0  }
  0x3b   : > { %540 = vst [vmem:[#allocation2] sm:$0xff] %v798_v30 }
  0x3c PF: > { %p560_p12 = scmp.ge.s32.totalorder %s888_s15, 0  ;;  %p561_p13 = scmp.lt.s32.totalorder %s888_s15, 2 }
  0x3d   : > { %p565_p0 = scmp.ge.s32.totalorder %s888_s15, 2  ;;  %p566_p1 = scmp.lt.s32.totalorder %s888_s15, 3 }
  0x3e   : > { %p562_p2 = pnand %p561_p13, %p560_p12  ;;  %p710_p4 = scmp.ne.s32.totalorder %s780_s9, 1 }
  0x3f   : > { %p567_p3 = pnand %p566_p1, %p565_p0 }
  0x40   : > { %s708_s20 = scalar_select %p562_p2, 0.0, 0.0006510417 }
  0x42   : > { %v541_v31 = vld [vmem:[#allocation18] sm:$0xf]  ;;  %s1020_s20 = smov (!%p567_p3, %s708_s20), 0.0026041667  ;;  %v570_v48 = vld [vmem:[#allocation2] sm:$0xff] }
  0x43   : > { %v542_v32 = vunpack.c.l.bf16 %v541_v31  ;;  %v571_v46 = vstv %s1020_s20 }
  0x45   : > { %v544_v33 = vand.u32 2147483647, %v542_v32  ;;  %v543_v43 = vmax.f32 %v542_v32, 0.0 }
  0x47   : > { %v545_v34 = vsub.f32 0.0, %v544_v33 }
  0x49   : > { %v546_v35 = vmul.f32 1.442695, %v545_v34 }
  0x4b   : > { %754 = vpow2.f32 %v546_v35 }
  0x51   : > { %v755_v36 = vpop.eup %754 }
  0x52   : > { %v548_v37 = vadd.f32 1.0, %v755_v36  ;;  %v551_v38 = vmul.f32 -0.5, %v755_v36  ;;  %v554_v40 = vand.u32 2147483647, %v755_v36 }
  0x54   : > { %756 = vlog2.f32 %v548_v37  ;;  %v552_v39 = vadd.f32 1.0, %v551_v38  ;;  %vm555_vm9 = vcmp.lt.f32.partialorder %v554_v40, 0.0004427343 }
  0x56   : > { %v553_v41 = vmul.f32 %v755_v36, %v552_v39 }
  0x5a   : > { %v757_v42 = vpop.eup %756 }
  0x5b   : > { %v550_v44 = vmul.f32 0.6931472, %v757_v42 }
  0x5d   : > { %v556_v45 = vsel %vm555_vm9, %v553_v41, %v550_v44 }
  0x5e   : > { %v557_v47 = vadd.f32 %v556_v45, %v543_v43 }
  0x60   : > { %v572_v49 = vmul.f32 %v571_v46, %v557_v47  ;;  %578 = sbr.rel (%p710_p4) target bundleno = 109 (0x6d), region = 40 }
  0x62   : > { %v573_v50 = vadd.f32 %v572_v49, %v570_v48 }
  0x64   : > { %574 = vst [vmem:[#allocation2] sm:$0xff] %v573_v50 }
  0x6b   : > { %v579_v51 = vld [vmem:[#allocation2] sm:$0xff] }
  0x6c   : > { %580 = vst [vmem:[%s902_s25] sm:$0xff] %v579_v51 }
  0x6d PF: > { %s39_s2 = sadd.s32 1, %s796_s2   ;;  %s1007_s9 = sld [smem:[#allocation19_spill]] }
  0x6e   : > { %p36_p5 = scmp.ge.s32.totalorder %s39_s2, 6   ;;  %s1008_s10 = sld [smem:[#allocation20_spill]] }
  0x6f   : > { %s1009_s11 = sld [smem:[#allocation21_spill]] }
  0x70   : > { %s1010_s12 = sld [smem:[#allocation22_spill]]  ;;  %38 = sbr.rel (!%p36_p5) target bundleno = 3 (0x3), region = 76 }

</bundles_post_ra>
